<compile_context>
chip_gen: v5e
topology: v5e:2x2
jax: 0.10.0
libtpu: 0.0.40
codegen_flags: <defaults>
</compile_context>

<pallas_src>
import functools

import jax
import jax.numpy as jnp
from jax.experimental import pallas as pl
from jax.experimental.pallas import tpu as pltpu


def _rnn_kernel(x_ref, w_in0_ref, w_rec0_ref, *rest,
                n_layer, seq_len, batch, unrolled):
    """Whole-sequence RNN recurrence in one kernel invocation.

    x_ref:       (T*B, F) bf16   time-major input (rows t*B .. t*B+B-1 = step t)
    w_in0_ref:   (F, H)   bf16   layer-0 input weight (transposed)
    w_rec0_ref:  (H, H)   bf16   layer-0 recurrent weight (transposed)
    w_fused_ref: (L-1, 2H, H) bf16   (only if n_layer > 1) rows [0:H]=W_ih^T, [H:2H]=W_hh^T
    b_ref:       (L, 1, H) f32   combined bias b_ih + b_hh
    out_ref:     (B, H)          last-layer hidden state at the final time step
    xp_ref:      (T, B, H) f32   scratch (only for the rolled / large-T path)
    """
    idx = 0
    if n_layer > 1:
        w_fused_ref = rest[idx]; idx += 1
    else:
        w_fused_ref = None
    b_ref = rest[idx]; idx += 1
    out_ref = rest[idx]; idx += 1
    xp_ref = None if unrolled else rest[idx]

    B, T, L = batch, seq_len, n_layer
    H = out_ref.shape[-1]

    # ---- hoisted (pre-recurrence) work --------------------------------------------
    w_rec0 = w_rec0_ref[...]                                            # (H, H) bf16
    w_fused = ([w_fused_ref[l] for l in range(L - 1)] if L > 1 else [])
    biases = [jnp.broadcast_to(b_ref[l], (B, H)) for l in range(1, L)]  # hoisted broadcasts

    # Layer-0 input projection for ALL time steps in one batched MXU matmul,
    # pulled out of the serial dependency chain of the recurrence.
    xp_all = jnp.dot(x_ref[...], w_in0_ref[...],
                     preferred_element_type=jnp.float32) + b_ref[0]     # (T*B, H) f32

    def layer_stack(xpt, h):
        """One time step across all layers; h is a tuple of (B, H) f32."""
        pre0 = xpt + jnp.dot(h[0].astype(jnp.bfloat16), w_rec0,
                             preferred_element_type=jnp.float32)
        new_h = [jnp.tanh(pre0)]
        for l in range(1, L):
            cat = jnp.concatenate([new_h[l - 1], h[l]], axis=1).astype(jnp.bfloat16)
            pre = jnp.dot(cat, w_fused[l - 1],
                          preferred_element_type=jnp.float32) + biases[l - 1]
            new_h.append(jnp.tanh(pre))
        return tuple(new_h)

    h0 = tuple(jnp.zeros((B, H), jnp.float32) for _ in range(L))

    if unrolled:
        # ---- small/medium T: register-resident xp, fully unrolled, static slices ---
        h = h0
        for t in range(T):
            xpt = xp_all[t * B:(t + 1) * B, :]        # static slice, no VMEM round-trip
            h = layer_stack(xpt, h)
        h_final = h
    else:
        # ---- large T: aligned per-step (B, H) tiles from a (T, B, H) VMEM scratch --
        xp_ref[...] = xp_all.reshape(T, B, H)         # one-time store, off the chain

        def step(t, h):
            return layer_stack(xp_ref[t], h)          # leading-axis (aligned) load

        # TODO(synk): wavefront-skew (compute layer l at time s-l) to cut the serial
        #             chain from T*L to T+L-1 dependent matmul+tanh stages.
        h_final = jax.lax.fori_loop(0, T, step, h0, unroll=2)

    out_ref[...] = h_final[L - 1].astype(out_ref.dtype)


def _compiler_params(resident_bytes):
    kwargs = dict(dimension_semantics=("arbitrary",))
    # Only bump the scoped VMEM limit when the resident footprint gets close to the
    # 16/32 MiB defaults (v5e/v6e+); capped below v7x's 64 MiB physical VMEM.
    if resident_bytes > 24 * 1024 * 1024:
        kwargs["vmem_limit_bytes"] = min(int(resident_bytes * 2) + (8 << 20), 60 << 20)
    return pltpu.CompilerParams(**kwargs)


def rnn_forward(x, wih0, wih_rest, whh, bias, *, unroll_t_max=32):
    """x: (B, n_feature, T), exactly as the PyTorch module receives it."""
    B, F, T = x.shape
    L, H, _ = whh.shape
    out_dtype = x.dtype

    # Host-side bf16 cast of the streamed input: halves its HBM->VMEM DMA and VMEM
    # footprint; the MXU operand was already bf16, so numerics are unchanged.
    x2d = jnp.transpose(x, (2, 0, 1)).reshape(T * B, F).astype(jnp.bfloat16)
    w_in0 = wih0.astype(jnp.bfloat16)                   # (F, H)
    w_rec0 = whh[0].astype(jnp.bfloat16)                # (H, H)

    inputs = [x2d, w_in0, w_rec0]
    in_specs = [
        pl.BlockSpec((T * B, F), lambda i: (0, 0)),
        pl.BlockSpec((F, H), lambda i: (0, 0)),
        pl.BlockSpec((H, H), lambda i: (0, 0)),
    ]
    if L > 1:
        # Fused [W_ih; W_hh] per layer l >= 1 -> one MXU matmul per layer per step.
        w_fused = jnp.concatenate([wih_rest, whh[1:]], axis=1).astype(jnp.bfloat16)
        inputs.append(w_fused)                          # (L-1, 2H, H)
        in_specs.append(pl.BlockSpec((L - 1, 2 * H, H), lambda i: (0, 0, 0)))
    inputs.append(bias.astype(jnp.float32))             # (L, 1, H)
    in_specs.append(pl.BlockSpec((L, 1, H), lambda i: (0, 0, 0)))

    unrolled = T <= unroll_t_max
    scratch_shapes = [] if unrolled else [pltpu.VMEM((T, B, H), jnp.float32)]

    # Rough resident-VMEM estimate (inputs + padded scratch + output).
    resident = (x2d.size * 2
                + (F * H + H * H) * 2
                + (0 if L <= 1 else (L - 1) * 2 * H * H * 2)
                + L * H * 4
                + (0 if unrolled else T * 8 * max(128, H) * 4)
                + B * H * 4)

    kernel = functools.partial(_rnn_kernel, n_layer=L, seq_len=T, batch=B,
                               unrolled=unrolled)
    return pl.pallas_call(
        kernel,
        out_shape=jax.ShapeDtypeStruct((B, H), out_dtype),
        grid_spec=pltpu.PrefetchScalarGridSpec(
            num_scalar_prefetch=0,
            grid=(1,),
            in_specs=in_specs,
            out_specs=pl.BlockSpec((B, H), lambda i: (0, 0)),
            scratch_shapes=scratch_shapes,
        ),
        compiler_params=_compiler_params(resident),
    )(*inputs)


def rnn_reference(x, wih0, wih_rest, whh, bias):
    """Pure-JAX reference matching torch.nn.RNN semantics (zero initial hidden state),
    with the same bf16 matmul-operand quantization as the kernel."""
    B, F, T = x.shape
    L, H, _ = whh.shape
    xs = jnp.transpose(x, (2, 0, 1)).astype(jnp.float32)   # (T, B, F)
    h0 = jnp.zeros((L, B, H), jnp.float32)

    def bf16_dot(a, b):
        return jnp.dot(a.astype(jnp.bfloat16), b.astype(jnp.bfloat16),
                       preferred_element_type=jnp.float32)

    def step(h, xt):
        new_h = []
        inp = xt
        for l in range(L):
            w_in = wih0 if l == 0 else wih_rest[l - 1]
            hl = jnp.tanh(bf16_dot(inp, w_in) + bf16_dot(h[l], whh[l]) + bias[l])
            new_h.append(hl)
            inp = hl
        return jnp.stack(new_h), None

    h, _ = jax.lax.scan(step, h0, xs)
    return h[L - 1]


def init_params(key, n_feature, n_class, n_layer):
    """Deterministic init mirroring torch.nn.RNN shapes (U(-1/sqrt(H), 1/sqrt(H)))."""
    H, F, L = n_class, n_feature, n_layer
    k = 1.0 / jnp.sqrt(jnp.float32(H))
    keys = jax.random.split(key, 4 * L)

    def u(kk, shape):
        return jax.random.uniform(kk, shape, jnp.float32, -k, k)

    # torch stores weight_ih_l as (H, in), weight_hh_l as (H, H); we keep transposes.
    wih0 = u(keys[0], (F, H))                                          # W_ih_l0.T
    wih_rest = (jnp.stack([u(keys[4 * l + 0], (H, H)) for l in range(1, L)])
                if L > 1 else None)                                    # W_ih_l{1..}.T
    whh = jnp.stack([u(keys[4 * l + 1], (H, H)) for l in range(L)])    # W_hh_l.T
    bias = jnp.stack([
        (u(keys[4 * l + 2], (H,)) + u(keys[4 * l + 3], (H,))).reshape(1, H)
        for l in range(L)
    ])                                                                 # b_ih+b_hh (L,1,H)
    return wih0, wih_rest, whh, bias


if __name__ == "__main__":
    B, n_feature, n_class, n_layer = 2, 4, 32, 2
    key = jax.random.PRNGKey(0)
    kx, kp, kx2 = jax.random.split(key, 3)

    # Path 1: small T -> fully unrolled, register-resident xp (no VMEM scratch).
    T = 8
    x = jax.random.normal(kx, (B, n_feature, T), jnp.float32)
    wih0, wih_rest, whh, bias = init_params(kp, n_feature, n_class, n_layer)
    out = jax.block_until_ready(rnn_forward(x, wih0, wih_rest, whh, bias))
    ref = rnn_reference(x, wih0, wih_rest, whh, bias)
    assert out.shape == (B, n_class), out.shape
    assert jnp.allclose(out, ref, atol=1e-2, rtol=1e-2), (out, ref)

    # Path 2: longer T -> rolled fori_loop (unroll=2) + aligned (T, B, H) VMEM scratch.
    T2 = 64
    x2 = jax.random.normal(kx2, (B, n_feature, T2), jnp.float32)
    out2 = jax.block_until_ready(rnn_forward(x2, wih0, wih_rest, whh, bias))
    ref2 = rnn_reference(x2, wih0, wih_rest, whh, bias)
    assert out2.shape == (B, n_class), out2.shape
    assert jnp.allclose(out2, ref2, atol=1e-2, rtol=1e-2), (out2, ref2)

    # Path 3: single-layer branch (no fused weight input).
    wih0_1, wih_rest_1, whh_1, bias_1 = init_params(kp, n_feature, n_class, 1)
    out1 = jax.block_until_ready(rnn_forward(x, wih0_1, wih_rest_1, whh_1, bias_1))
    ref1 = rnn_reference(x, wih0_1, wih_rest_1, whh_1, bias_1)
    assert jnp.allclose(out1, ref1, atol=1e-2, rtol=1e-2), (out1, ref1)

    print("KERNEL_OK")
</pallas_src>

<mosaic_0001>
module attributes {stable_mosaic.version = 11 : i64} {
  func.func @_rnn_kernel(%arg0: i32, %arg1: memref<16x4xbf16, #tpu.memory_space<vmem>>, %arg2: memref<4x32xbf16, #tpu.memory_space<vmem>>, %arg3: memref<32x32xbf16, #tpu.memory_space<vmem>>, %arg4: memref<1x64x32xbf16, #tpu.memory_space<vmem>>, %arg5: memref<2x1x32xf32, #tpu.memory_space<vmem>>, %arg6: memref<2x32xf32, #tpu.memory_space<vmem>>) attributes {dimension_semantics = [#tpu.dimension_semantics<arbitrary>], iteration_bounds = array<i64: 1>, scalar_prefetch = 0 : i64, scratch_operands = 0 : i64, tpu.core_type = #tpu.core_type<tc>, window_params = [{pipeline_mode = #tpu.pipeline_mode<synchronous>, transform_indices = @transform_0, window_bounds = array<i64: 16, 4>}, {pipeline_mode = #tpu.pipeline_mode<synchronous>, transform_indices = @transform_1, window_bounds = array<i64: 4, 32>}, {pipeline_mode = #tpu.pipeline_mode<synchronous>, transform_indices = @transform_2, window_bounds = array<i64: 32, 32>}, {pipeline_mode = #tpu.pipeline_mode<synchronous>, transform_indices = @transform_3, window_bounds = array<i64: 1, 64, 32>}, {pipeline_mode = #tpu.pipeline_mode<synchronous>, transform_indices = @transform_4, window_bounds = array<i64: 2, 1, 32>}, {pipeline_mode = #tpu.pipeline_mode<synchronous>, transform_indices = @transform_5, window_bounds = array<i64: 2, 32>}]} {
    %c0 = arith.constant 0 : index
    %c0_0 = arith.constant 0 : index
    %0 = vector.load %arg3[%c0, %c0_0] : memref<32x32xbf16, #tpu.memory_space<vmem>>, vector<32x32xbf16>
    %c0_1 = arith.constant 0 : index
    %c0_2 = arith.constant 0 : index
    %c0_3 = arith.constant 0 : index
    %1 = vector.load %arg4[%c0_1, %c0_2, %c0_3] : memref<1x64x32xbf16, #tpu.memory_space<vmem>>, vector<1x64x32xbf16>
    %2 = vector.shape_cast %1 : vector<1x64x32xbf16> to vector<64x32xbf16>
    %c1 = arith.constant 1 : index
    %c0_4 = arith.constant 0 : index
    %c0_5 = arith.constant 0 : index
    %3 = vector.load %arg5[%c1, %c0_4, %c0_5] : memref<2x1x32xf32, #tpu.memory_space<vmem>>, vector<1x1x32xf32>
    %4 = vector.shape_cast %3 : vector<1x1x32xf32> to vector<1x32xf32>
    %5 = vector.shape_cast %4 : vector<1x32xf32> to vector<1x32xf32>
    %6 = vector.broadcast %5 : vector<1x32xf32> to vector<2x32xf32>
    %c0_6 = arith.constant 0 : index
    %c0_7 = arith.constant 0 : index
    %7 = vector.load %arg1[%c0_6, %c0_7] : memref<16x4xbf16, #tpu.memory_space<vmem>>, vector<16x4xbf16>
    %c0_8 = arith.constant 0 : index
    %c0_9 = arith.constant 0 : index
    %8 = vector.load %arg2[%c0_8, %c0_9] : memref<4x32xbf16, #tpu.memory_space<vmem>>, vector<4x32xbf16>
    %cst = arith.constant dense<0.000000e+00> : vector<16x32xf32>
    %9 = tpu.matmul %7, %8, %cst {dimension_numbers = #tpu.dot_dimension_numbers<[1], [0], [0], [1], [0, 0, 1, 1], [], []>} : vector<16x4xbf16>, vector<4x32xbf16>, vector<16x32xf32> -> vector<16x32xf32>
    %c0_10 = arith.constant 0 : index
    %c0_11 = arith.constant 0 : index
    %c0_12 = arith.constant 0 : index
    %10 = vector.load %arg5[%c0_10, %c0_11, %c0_12] : memref<2x1x32xf32, #tpu.memory_space<vmem>>, vector<1x1x32xf32>
    %11 = vector.shape_cast %10 : vector<1x1x32xf32> to vector<1x32xf32>
    %12 = vector.broadcast %11 : vector<1x32xf32> to vector<16x32xf32>
    %13 = arith.addf %9, %12 : vector<16x32xf32>
    %cst_13 = arith.constant 0.000000e+00 : f32
    %14 = vector.broadcast %cst_13 : f32 to vector<2x32xf32>
    %cst_14 = arith.constant 0.000000e+00 : f32
    %15 = vector.broadcast %cst_14 : f32 to vector<2x32xf32>
    %16 = vector.extract_strided_slice %13 {offsets = [0, 0], sizes = [2, 32], strides = [1, 1]} : vector<16x32xf32> to vector<2x32xf32>
    %17 = arith.truncf %14 : vector<2x32xf32> to vector<2x32xbf16>
    %cst_15 = arith.constant dense<0.000000e+00> : vector<2x32xf32>
    %18 = tpu.matmul %17, %0, %cst_15 {dimension_numbers = #tpu.dot_dimension_numbers<[1], [0], [0], [1], [0, 0, 1, 1], [], []>} : vector<2x32xbf16>, vector<32x32xbf16>, vector<2x32xf32> -> vector<2x32xf32>
    %19 = arith.addf %16, %18 : vector<2x32xf32>
    %20 = math.tanh %19 : vector<2x32xf32>
    %21 = tpu.concatenate %20, %15 in 1 : vector<2x32xf32>, vector<2x32xf32> -> vector<2x64xf32>
    %22 = arith.truncf %21 : vector<2x64xf32> to vector<2x64xbf16>
    %cst_16 = arith.constant dense<0.000000e+00> : vector<2x32xf32>
    %23 = tpu.matmul %22, %2, %cst_16 {dimension_numbers = #tpu.dot_dimension_numbers<[1], [0], [0], [1], [0, 0, 1, 1], [], []>} : vector<2x64xbf16>, vector<64x32xbf16>, vector<2x32xf32> -> vector<2x32xf32>
    %24 = arith.addf %23, %6 : vector<2x32xf32>
    %25 = math.tanh %24 : vector<2x32xf32>
    %26 = vector.extract_strided_slice %13 {offsets = [2, 0], sizes = [2, 32], strides = [1, 1]} : vector<16x32xf32> to vector<2x32xf32>
    %27 = arith.truncf %20 : vector<2x32xf32> to vector<2x32xbf16>
    %cst_17 = arith.constant dense<0.000000e+00> : vector<2x32xf32>
    %28 = tpu.matmul %27, %0, %cst_17 {dimension_numbers = #tpu.dot_dimension_numbers<[1], [0], [0], [1], [0, 0, 1, 1], [], []>} : vector<2x32xbf16>, vector<32x32xbf16>, vector<2x32xf32> -> vector<2x32xf32>
    %29 = arith.addf %26, %28 : vector<2x32xf32>
    %30 = math.tanh %29 : vector<2x32xf32>
    %31 = tpu.concatenate %30, %25 in 1 : vector<2x32xf32>, vector<2x32xf32> -> vector<2x64xf32>
    %32 = arith.truncf %31 : vector<2x64xf32> to vector<2x64xbf16>
    %cst_18 = arith.constant dense<0.000000e+00> : vector<2x32xf32>
    %33 = tpu.matmul %32, %2, %cst_18 {dimension_numbers = #tpu.dot_dimension_numbers<[1], [0], [0], [1], [0, 0, 1, 1], [], []>} : vector<2x64xbf16>, vector<64x32xbf16>, vector<2x32xf32> -> vector<2x32xf32>
    %34 = arith.addf %33, %6 : vector<2x32xf32>
    %35 = math.tanh %34 : vector<2x32xf32>
    %36 = vector.extract_strided_slice %13 {offsets = [4, 0], sizes = [2, 32], strides = [1, 1]} : vector<16x32xf32> to vector<2x32xf32>
    %37 = arith.truncf %30 : vector<2x32xf32> to vector<2x32xbf16>
    %cst_19 = arith.constant dense<0.000000e+00> : vector<2x32xf32>
    %38 = tpu.matmul %37, %0, %cst_19 {dimension_numbers = #tpu.dot_dimension_numbers<[1], [0], [0], [1], [0, 0, 1, 1], [], []>} : vector<2x32xbf16>, vector<32x32xbf16>, vector<2x32xf32> -> vector<2x32xf32>
    %39 = arith.addf %36, %38 : vector<2x32xf32>
    %40 = math.tanh %39 : vector<2x32xf32>
    %41 = tpu.concatenate %40, %35 in 1 : vector<2x32xf32>, vector<2x32xf32> -> vector<2x64xf32>
    %42 = arith.truncf %41 : vector<2x64xf32> to vector<2x64xbf16>
    %cst_20 = arith.constant dense<0.000000e+00> : vector<2x32xf32>
    %43 = tpu.matmul %42, %2, %cst_20 {dimension_numbers = #tpu.dot_dimension_numbers<[1], [0], [0], [1], [0, 0, 1, 1], [], []>} : vector<2x64xbf16>, vector<64x32xbf16>, vector<2x32xf32> -> vector<2x32xf32>
    %44 = arith.addf %43, %6 : vector<2x32xf32>
    %45 = math.tanh %44 : vector<2x32xf32>
    %46 = vector.extract_strided_slice %13 {offsets = [6, 0], sizes = [2, 32], strides = [1, 1]} : vector<16x32xf32> to vector<2x32xf32>
    %47 = arith.truncf %40 : vector<2x32xf32> to vector<2x32xbf16>
    %cst_21 = arith.constant dense<0.000000e+00> : vector<2x32xf32>
    %48 = tpu.matmul %47, %0, %cst_21 {dimension_numbers = #tpu.dot_dimension_numbers<[1], [0], [0], [1], [0, 0, 1, 1], [], []>} : vector<2x32xbf16>, vector<32x32xbf16>, vector<2x32xf32> -> vector<2x32xf32>
    %49 = arith.addf %46, %48 : vector<2x32xf32>
    %50 = math.tanh %49 : vector<2x32xf32>
    %51 = tpu.concatenate %50, %45 in 1 : vector<2x32xf32>, vector<2x32xf32> -> vector<2x64xf32>
    %52 = arith.truncf %51 : vector<2x64xf32> to vector<2x64xbf16>
    %cst_22 = arith.constant dense<0.000000e+00> : vector<2x32xf32>
    %53 = tpu.matmul %52, %2, %cst_22 {dimension_numbers = #tpu.dot_dimension_numbers<[1], [0], [0], [1], [0, 0, 1, 1], [], []>} : vector<2x64xbf16>, vector<64x32xbf16>, vector<2x32xf32> -> vector<2x32xf32>
    %54 = arith.addf %53, %6 : vector<2x32xf32>
    %55 = math.tanh %54 : vector<2x32xf32>
    %56 = vector.extract_strided_slice %13 {offsets = [8, 0], sizes = [2, 32], strides = [1, 1]} : vector<16x32xf32> to vector<2x32xf32>
    %57 = arith.truncf %50 : vector<2x32xf32> to vector<2x32xbf16>
    %cst_23 = arith.constant dense<0.000000e+00> : vector<2x32xf32>
    %58 = tpu.matmul %57, %0, %cst_23 {dimension_numbers = #tpu.dot_dimension_numbers<[1], [0], [0], [1], [0, 0, 1, 1], [], []>} : vector<2x32xbf16>, vector<32x32xbf16>, vector<2x32xf32> -> vector<2x32xf32>
    %59 = arith.addf %56, %58 : vector<2x32xf32>
    %60 = math.tanh %59 : vector<2x32xf32>
    %61 = tpu.concatenate %60, %55 in 1 : vector<2x32xf32>, vector<2x32xf32> -> vector<2x64xf32>
    %62 = arith.truncf %61 : vector<2x64xf32> to vector<2x64xbf16>
    %cst_24 = arith.constant dense<0.000000e+00> : vector<2x32xf32>
    %63 = tpu.matmul %62, %2, %cst_24 {dimension_numbers = #tpu.dot_dimension_numbers<[1], [0], [0], [1], [0, 0, 1, 1], [], []>} : vector<2x64xbf16>, vector<64x32xbf16>, vector<2x32xf32> -> vector<2x32xf32>
    %64 = arith.addf %63, %6 : vector<2x32xf32>
    %65 = math.tanh %64 : vector<2x32xf32>
    %66 = vector.extract_strided_slice %13 {offsets = [10, 0], sizes = [2, 32], strides = [1, 1]} : vector<16x32xf32> to vector<2x32xf32>
    %67 = arith.truncf %60 : vector<2x32xf32> to vector<2x32xbf16>
    %cst_25 = arith.constant dense<0.000000e+00> : vector<2x32xf32>
    %68 = tpu.matmul %67, %0, %cst_25 {dimension_numbers = #tpu.dot_dimension_numbers<[1], [0], [0], [1], [0, 0, 1, 1], [], []>} : vector<2x32xbf16>, vector<32x32xbf16>, vector<2x32xf32> -> vector<2x32xf32>
    %69 = arith.addf %66, %68 : vector<2x32xf32>
    %70 = math.tanh %69 : vector<2x32xf32>
    %71 = tpu.concatenate %70, %65 in 1 : vector<2x32xf32>, vector<2x32xf32> -> vector<2x64xf32>
    %72 = arith.truncf %71 : vector<2x64xf32> to vector<2x64xbf16>
    %cst_26 = arith.constant dense<0.000000e+00> : vector<2x32xf32>
    %73 = tpu.matmul %72, %2, %cst_26 {dimension_numbers = #tpu.dot_dimension_numbers<[1], [0], [0], [1], [0, 0, 1, 1], [], []>} : vector<2x64xbf16>, vector<64x32xbf16>, vector<2x32xf32> -> vector<2x32xf32>
    %74 = arith.addf %73, %6 : vector<2x32xf32>
    %75 = math.tanh %74 : vector<2x32xf32>
    %76 = vector.extract_strided_slice %13 {offsets = [12, 0], sizes = [2, 32], strides = [1, 1]} : vector<16x32xf32> to vector<2x32xf32>
    %77 = arith.truncf %70 : vector<2x32xf32> to vector<2x32xbf16>
    %cst_27 = arith.constant dense<0.000000e+00> : vector<2x32xf32>
    %78 = tpu.matmul %77, %0, %cst_27 {dimension_numbers = #tpu.dot_dimension_numbers<[1], [0], [0], [1], [0, 0, 1, 1], [], []>} : vector<2x32xbf16>, vector<32x32xbf16>, vector<2x32xf32> -> vector<2x32xf32>
    %79 = arith.addf %76, %78 : vector<2x32xf32>
    %80 = math.tanh %79 : vector<2x32xf32>
    %81 = tpu.concatenate %80, %75 in 1 : vector<2x32xf32>, vector<2x32xf32> -> vector<2x64xf32>
    %82 = arith.truncf %81 : vector<2x64xf32> to vector<2x64xbf16>
    %cst_28 = arith.constant dense<0.000000e+00> : vector<2x32xf32>
    %83 = tpu.matmul %82, %2, %cst_28 {dimension_numbers = #tpu.dot_dimension_numbers<[1], [0], [0], [1], [0, 0, 1, 1], [], []>} : vector<2x64xbf16>, vector<64x32xbf16>, vector<2x32xf32> -> vector<2x32xf32>
    %84 = arith.addf %83, %6 : vector<2x32xf32>
    %85 = math.tanh %84 : vector<2x32xf32>
    %86 = vector.extract_strided_slice %13 {offsets = [14, 0], sizes = [2, 32], strides = [1, 1]} : vector<16x32xf32> to vector<2x32xf32>
    %87 = arith.truncf %80 : vector<2x32xf32> to vector<2x32xbf16>
    %cst_29 = arith.constant dense<0.000000e+00> : vector<2x32xf32>
    %88 = tpu.matmul %87, %0, %cst_29 {dimension_numbers = #tpu.dot_dimension_numbers<[1], [0], [0], [1], [0, 0, 1, 1], [], []>} : vector<2x32xbf16>, vector<32x32xbf16>, vector<2x32xf32> -> vector<2x32xf32>
    %89 = arith.addf %86, %88 : vector<2x32xf32>
    %90 = math.tanh %89 : vector<2x32xf32>
    %91 = tpu.concatenate %90, %85 in 1 : vector<2x32xf32>, vector<2x32xf32> -> vector<2x64xf32>
    %92 = arith.truncf %91 : vector<2x64xf32> to vector<2x64xbf16>
    %cst_30 = arith.constant dense<0.000000e+00> : vector<2x32xf32>
    %93 = tpu.matmul %92, %2, %cst_30 {dimension_numbers = #tpu.dot_dimension_numbers<[1], [0], [0], [1], [0, 0, 1, 1], [], []>} : vector<2x64xbf16>, vector<64x32xbf16>, vector<2x32xf32> -> vector<2x32xf32>
    %94 = arith.addf %93, %6 : vector<2x32xf32>
    %95 = math.tanh %94 : vector<2x32xf32>
    %c0_31 = arith.constant 0 : index
    %c0_32 = arith.constant 0 : index
    %96 = vector.load %arg6[%c0_31, %c0_32] : memref<2x32xf32, #tpu.memory_space<vmem>>, vector<2x32xf32>
    tpu.vector_store %arg6[%c0_31, %c0_32], %95 {strides = array<i32>} : memref<2x32xf32, #tpu.memory_space<vmem>>, vector<2x32xf32>,
    return
  }
  func.func @transform_0(%arg0: i32) -> (i32, i32) {
    %c0_i32 = arith.constant 0 : i32
    %c0_i32_0 = arith.constant 0 : i32
    %c0_i32_1 = arith.constant 0 : i32
    return %c0_i32, %c0_i32_0 : i32, i32
  }
  func.func @transform_1(%arg0: i32) -> (i32, i32) {
    %c0_i32 = arith.constant 0 : i32
    %c0_i32_0 = arith.constant 0 : i32
    %c0_i32_1 = arith.constant 0 : i32
    return %c0_i32, %c0_i32_0 : i32, i32
  }
  func.func @transform_2(%arg0: i32) -> (i32, i32) {
    %c0_i32 = arith.constant 0 : i32
    %c0_i32_0 = arith.constant 0 : i32
    %c0_i32_1 = arith.constant 0 : i32
    return %c0_i32, %c0_i32_0 : i32, i32
  }
  func.func @transform_3(%arg0: i32) -> (i32, i32, i32) {
    %c0_i32 = arith.constant 0 : i32
    %c0_i32_0 = arith.constant 0 : i32
    %c0_i32_1 = arith.constant 0 : i32
    %c0_i32_2 = arith.constant 0 : i32
    return %c0_i32, %c0_i32_0, %c0_i32_1 : i32, i32, i32
  }
  func.func @transform_4(%arg0: i32) -> (i32, i32, i32) {
    %c0_i32 = arith.constant 0 : i32
    %c0_i32_0 = arith.constant 0 : i32
    %c0_i32_1 = arith.constant 0 : i32
    %c0_i32_2 = arith.constant 0 : i32
    return %c0_i32, %c0_i32_0, %c0_i32_1 : i32, i32, i32
  }
  func.func @transform_5(%arg0: i32) -> (i32, i32) {
    %c0_i32 = arith.constant 0 : i32
    %c0_i32_0 = arith.constant 0 : i32
    %c0_i32_1 = arith.constant 0 : i32
    return %c0_i32, %c0_i32_0 : i32, i32
  }
}

</mosaic_0001>

<bundles_post_ra>
// kernel: tpu_custom_call.1
= control target key start
LH: loop header
LB: loop body
LE: loop exit
PB: predicated region body
PF: predicated region fallthrough
CT: control target
= control target key end

     0   :  { %vm55_vm0 = vcmask 1041408   ;;  %vm51_vm1 = vcmask 31744   ;;  %s803_s0 = inlined_call_operand.vmem [shape: bf16[16,4], index: 0, kind: input, shape index: {}]   ;;  %s804_s1 = inlined_call_operand.vmem [shape: bf16[4,32], index: 1, kind: input, shape index: {}]   ;;  %s805_s2 = inlined_call_operand.vmem [shape: bf16[32,32], index: 2, kind: input, shape index: {}]   ;;  %s806_s3 = inlined_call_operand.vmem [shape: bf16[1,64,32], index: 3, kind: input, shape index: {}]   ;;  %s807_s4 = inlined_call_operand.vmem [shape: f32[2,1,32], index: 4, kind: input, shape index: {}]   ;;  %s808_s5 = inlined_call_operand.hbm [shape: f32[2,32], index: 5, kind: output, shape index: {}]  }
   0x1   :  { %v41_v0 = vld [vmem:[%s804_s1] sm:$0x3]  ;;  %v660_v1 = vld [vmem:[%s805_s2 + $0x8] sm:$0xff] }
   0x2   :  { %v57_v2 = vsel %vm55_vm0, %v41_v0, 0  ;;  %v557_v3 = vld [vmem:[%s803_s0] sm:$0xff]  ;;  %95 = vmatpush.bf16.msra.mxu1 %v660_v1 }
   0x3   :  { %66 = vmatpush.bf16.msra.mxu0 %v57_v2  ;;  %v669_v4 = vld [vmem:[%s805_s2] sm:$0xff] }
   0x4   :  { %10 = vsyncpa [#allocation3], 0  ;;  %158 = vmatpush.bf16.msra.mxu3 %v660_v1  ;;  %v621_v5 = vmov 0   ;;  %v681_v6 = vld [vmem:[%s806_s3 + $0x18] sm:$0xff]  ;;  %v689_v7 = vld [vmem:[%s806_s3 + $0x10] sm:$0xff]  ;;  %vm85_vm2 = vcmask 261120  }
   0x5   :  { %138 = vmatpush.bf16.msra.mxu2 %v681_v6  ;;  %v697_v8 = vld [vmem:[%s806_s3 + $0x8] sm:$0xff]  ;;  %v705_v9 = vld [vmem:[%s806_s3] sm:$0xff]  ;;  %vm130_vm3 = vcmask 523264   ;;  %s622_s9 = smov 32   ;;  %s497_s13 = sshll.u32 %s808_s5, 4  ;;  %vm488_vm4 = vcmask 254976   ;;  %s498_s13 = int_to_ptr.hbm [resolvable:$true] %s497_s13 }
   0x6   :  { %511 = vmatmul.msk.bf16.vlgmr.msra.gmra.mxu0 %vm51_vm1, %v557_v3  ;;  %96 = vmatpush.bf16.msra.mxu1 %v669_v4  ;;  %v719_v10 = vld [vmem:[%s807_s4] ss:$0 sm:$0xff]  ;;  %v737_v20 = vld [vmem:[%s807_s4 + $0x1] ss:$0 sm:$0xff]  ;;  %s623_s4 = smov [#allocation2]  }
   0x7   :  { %186 = vmatpush.bf16.msrb.mxu0 %v681_v6  ;;  %s495_s10 = sshll.u32 %s623_s4, 4  ;;  %s496_s10 = int_to_ptr.vmem [resolvable:$true] %s495_s10 }
   0x8   :  { %159 = vmatpush.bf16.msra.mxu3 %v669_v4 }
   0x9   :  { %97 = vmatmul.bf16.vlgmr.msra.gmra.mxu1 %v621_v5  ;;  %139 = vmatpush.bf16.msra.mxu2 %v689_v7 }
   0xa   :  { %208 = vmatpush.bf16.msrb.mxu1 %v660_v1 }
   0xb   :  { %187 = vmatpush.bf16.msrb.mxu0 %v689_v7 }
   0xc   :  { %236 = vmatpush.bf16.msrb.mxu3 %v681_v6 }
   0xd   :  { %140 = vmatpush.bf16.msra.mxu2 %v697_v8 }
   0xe   :  { %209 = vmatpush.bf16.msrb.mxu1 %v669_v4 }
   0xf   :  { %188 = vmatpush.bf16.msrb.mxu0 %v697_v8 }
  0x10   :  { %237 = vmatpush.bf16.msrb.mxu3 %v689_v7 }
  0x11   :  { %141 = vmatpush.bf16.msra.mxu2 %v705_v9 }
  0x12   :  { %308 = vmatpush.bf16.msra.mxu1 %v660_v1 }
  0x13   :  { %189 = vmatpush.bf16.msrb.mxu0 %v705_v9 }
  0x14   :  { %238 = vmatpush.bf16.msrb.mxu3 %v697_v8 }
  0x15   :  { %258 = vmatpush.bf16.msrb.mxu2 %v660_v1 }
  0x16   :  { %309 = vmatpush.bf16.msra.mxu1 %v669_v4 }
  0x17   :  { %286 = vmatpush.bf16.msra.mxu0 %v681_v6 }
  0x18   :  { %239 = vmatpush.bf16.msrb.mxu3 %v705_v9 }
  0x19   :  { %259 = vmatpush.bf16.msrb.mxu2 %v669_v4 }
  0x1b   :  { %287 = vmatpush.bf16.msra.mxu0 %v689_v7 }
  0x1f   :  { %288 = vmatpush.bf16.msra.mxu0 %v697_v8 }
  0x23   :  { %289 = vmatpush.bf16.msra.mxu0 %v705_v9 }
  0x83   :  { %v68_v11 = vpop.f32.mrf.mxu0 }
  0x84   :  { %v722_v12 = vadd.f32 %v719_v10, %v68_v11 }
  0x86   :  { %v98_v13 = vpop.f32.mrf.mxu1 }
  0x87   :  { %v102_v14 = vadd.f32 %v98_v13, %v722_v12 }
  0x89   :  { %563 = vtanh.f32 %v102_v14 }
  0x8b   :  { %v70_v44 = vpop.f32.mrf.mxu0 }
  0x8c   :  { %v766_v61 = vadd.f32 %v719_v10, %v70_v44 }
  0x8e   :  { %v100_v15 = vpop.f32.mrf.mxu1 }
  0x8f   :  { %v564_v16 = vpop.eup %563 }
  0x90   :  { %v148_v17 = vpack.c.bf16 %v564_v16, %v564_v16  ;;  %v104_v18 = vsel %vm85_vm2, %v564_v16, 0.0 }
  0x91   :  { %v105_v19 = vpack.c.bf16 %v104_v18, %v104_v18 }
  0x92   :  { %537 = vmatmul.msk.bf16.vlgmr.msra.gmra.mxu3 %vm85_vm2, %v148_v17 }
  0x93   :  { %536 = vmatmul.msk.bf16.vlgmr.msra.gmra.mxu2 %vm130_vm3, %v105_v19  ;;  %330 = vmatpush.bf16.msra.mxu3 %v681_v6 }
  0x94   :  { %350 = vmatpush.bf16.msra.mxu2 %v660_v1 }
  0x97   :  { %331 = vmatpush.bf16.msra.mxu3 %v689_v7 }
  0x98   :  { %351 = vmatpush.bf16.msra.mxu2 %v669_v4 }
  0x9b   :  { %332 = vmatpush.bf16.msra.mxu3 %v697_v8 }
  0x9f   :  { %333 = vmatpush.bf16.msra.mxu3 %v705_v9 }
 0x115   :  { %v161_v21 = vpop.f32.mrf.mxu3 }
 0x116   :  { %v166_v22 = vrot.slane %v161_v21, 6  ;;  %v143_v23 = vpop.f32.mrf.mxu2 }
 0x117   :  { %v144_v24 = vadd.f32 %v737_v20, %v143_v23 }
 0x118   :  { %v168_v25 = vadd.f32 %v166_v22, %v722_v12 }
 0x119   :  { %565 = vtanh.f32 %v144_v24 }
 0x11a   :  { %567 = vtanh.f32 %v168_v25 }
 0x11d   :  { %v163_v26 = vpop.f32.mrf.mxu3 }
 0x11e   :  { %v145_v27 = vpop.f32.mrf.mxu2 }
 0x11f   :  { %v566_v28 = vpop.eup %565 }
 0x120   :  { %v568_v29 = vpop.eup %567  ;;  %v171_v30 = vrot.slane %v566_v28, 6 }
 0x121   :  { %v196_v31 = vpack.c.bf16 %v568_v29, %v568_v29 }
 0x122   :  { %172 = vrot.lane.b32.xlu0 %v171_v30, %s622_s9 }
 0x123   :  { %v198_v32 = vrot.slane %v196_v31, 1 }
 0x125   :  { %539 = vmatmul.msk.bf16.vlgmr.msrb.gmra.mxu1 %vm85_vm2, %v198_v32 }
 0x126   :  { %400 = vmatpush.bf16.msrb.mxu1 %v660_v1 }
 0x12a   :  { %401 = vmatpush.bf16.msrb.mxu1 %v669_v4 }
 0x194   :  { %v173_v33 = vpop.permute.xlu0 %172 }
 0x195   :  { %v175_v34 = vsel %vm85_vm2, %v568_v29, %v173_v33 }
 0x196   :  { %v176_v35 = vpack.c.bf16 %v175_v34, %v175_v34 }
 0x198   :  { %v178_v36 = vrot.slane %v176_v35, 1 }
 0x19a   :  { %538 = vmatmul.msk.bf16.vlgmr.msrb.gmra.mxu0 %vm130_vm3, %v178_v36 }
 0x19b   :  { %378 = vmatpush.bf16.msrb.mxu0 %v681_v6 }
 0x19f   :  { %379 = vmatpush.bf16.msrb.mxu0 %v689_v7 }
 0x1a2   :  { %v211_v37 = vpop.f32.mrf.mxu1 }
 0x1a3   :  { %v216_v38 = vrot.slane %v211_v37, 4  ;;  %380 = vmatpush.bf16.msrb.mxu0 %v697_v8 }
 0x1a5   :  { %v218_v39 = vadd.f32 %v216_v38, %v722_v12 }
 0x1a7   :  { %569 = vtanh.f32 %v218_v39  ;;  %381 = vmatpush.bf16.msrb.mxu0 %v705_v9 }
 0x1aa   :  { %v213_v40 = vpop.f32.mrf.mxu1 }
 0x1ad   :  { %v570_v41 = vpop.eup %569 }
 0x1ae   :  { %v246_v42 = vpack.c.bf16 %v570_v41, %v570_v41 }
 0x1b0   :  { %v248_v43 = vrot.slane %v246_v42, 2 }
 0x1b2   :  { %541 = vmatmul.msk.bf16.vlgmr.msrb.gmra.mxu2 %vm85_vm2, %v248_v43 }
 0x1b3   :  { %450 = vmatpush.bf16.msrb.mxu2 %v660_v1 }
 0x1b7   :  { %451 = vmatpush.bf16.msrb.mxu2 %v669_v4 }
 0x217   :  { %v191_v45 = vpop.f32.mrf.mxu0 }
 0x218   :  { %v192_v46 = vadd.f32 %v737_v20, %v191_v45 }
 0x21a   :  { %571 = vtanh.f32 %v192_v46 }
 0x21f   :  { %v193_v47 = vpop.f32.mrf.mxu0 }
 0x220   :  { %v572_v48 = vpop.eup %571 }
 0x221   :  { %v221_v49 = vrot.slane %v572_v48, 4 }
 0x223   :  { %222 = vrot.lane.b32.xlu0 %v221_v49, %s622_s9 }
 0x235   :  { %v261_v50 = vpop.f32.mrf.mxu2 }
 0x236   :  { %v266_v51 = vrot.slane %v261_v50, 2 }
 0x238   :  { %v268_v52 = vadd.f32 %v266_v51, %v722_v12 }
 0x23a   :  { %573 = vtanh.f32 %v268_v52 }
 0x23d   :  { %v263_v53 = vpop.f32.mrf.mxu2 }
 0x240   :  { %v574_v54 = vpop.eup %573 }
 0x241   :  { %v296_v55 = vpack.c.bf16 %v574_v54, %v574_v54 }
 0x243   :  { %v298_v56 = vrot.slane %v296_v55, 3 }
 0x245   :  { %543 = vmatmul.msk.bf16.vlgmr.msra.gmra.mxu1 %vm85_vm2, %v298_v56 }
 0x295   :  { %v223_v57 = vpop.permute.xlu0 %222 }
 0x296   :  { %v225_v58 = vsel %vm85_vm2, %v570_v41, %v223_v57 }
 0x297   :  { %v226_v59 = vpack.c.bf16 %v225_v58, %v225_v58 }
 0x299   :  { %v228_v60 = vrot.slane %v226_v59, 2 }
 0x29b   :  { %540 = vmatmul.msk.bf16.vlgmr.msrb.gmra.mxu3 %vm130_vm3, %v228_v60 }
 0x29c   :  { %428 = vmatpush.bf16.msrb.mxu3 %v681_v6 }
 0x2a0   :  { %429 = vmatpush.bf16.msrb.mxu3 %v689_v7 }
 0x2a4   :  { %430 = vmatpush.bf16.msrb.mxu3 %v697_v8 }
 0x2a8   :  { %431 = vmatpush.bf16.msrb.mxu3 %v705_v9 }
 0x2c2   :  { %v311_v62 = vpop.f32.mrf.mxu1 }
 0x2c3   :  { %v315_v63 = vadd.f32 %v311_v62, %v766_v61 }
 0x2c5   :  { %575 = vtanh.f32 %v315_v63 }
 0x2ca   :  { %v313_v0 = vpop.f32.mrf.mxu1 }
 0x2cb   :  { %v576_v1 = vpop.eup %575 }
 0x2cc   :  { %v340_v2 = vpack.c.bf16 %v576_v1, %v576_v1 }
 0x2ce   :  { %545 = vmatmul.msk.bf16.vlgmr.msra.gmra.mxu2 %vm85_vm2, %v340_v2 }
 0x31e   :  { %v241_v3 = vpop.f32.mrf.mxu3 }
 0x31f   :  { %v242_v4 = vadd.f32 %v737_v20, %v241_v3 }
 0x321   :  { %577 = vtanh.f32 %v242_v4 }
 0x326   :  { %v243_v5 = vpop.f32.mrf.mxu3 }
 0x327   :  { %v578_v11 = vpop.eup %577 }
 0x328   :  { %v271_v12 = vrot.slane %v578_v11, 2 }
 0x32a   :  { %272 = vrot.lane.b32.xlu1 %v271_v12, %s622_s9 }
 0x351   :  { %v353_v10 = vpop.f32.mrf.mxu2 }
 0x352   :  { %v358_v13 = vrot.slane %v353_v10, 6 }
 0x354   :  { %v360_v14 = vadd.f32 %v358_v13, %v766_v61 }
 0x356   :  { %579 = vtanh.f32 %v360_v14 }
 0x359   :  { %v355_v15 = vpop.f32.mrf.mxu2 }
 0x35c   :  { %v580_v16 = vpop.eup %579 }
 0x35d   :  { %v388_v17 = vpack.c.bf16 %v580_v16, %v580_v16 }
 0x35f   :  { %v390_v18 = vrot.slane %v388_v17, 1 }
 0x361   :  { %547 = vmatmul.msk.bf16.vlgmr.msrb.gmra.mxu1 %vm85_vm2, %v390_v18 }
 0x39c   :  { %v273_v19 = vpop.permute.xlu1 %272 }
 0x39d   :  { %v275_v21 = vsel %vm85_vm2, %v574_v54, %v273_v19 }
 0x39e   :  { %v276_v22 = vpack.c.bf16 %v275_v21, %v275_v21 }
 0x3a0   :  { %v278_v23 = vrot.slane %v276_v22, 3 }
 0x3a2   :  { %542 = vmatmul.msk.bf16.vlgmr.msra.gmra.mxu0 %vm130_vm3, %v278_v23 }
 0x3a3   :  { %478 = vmatpush.bf16.msra.mxu0 %v681_v6 }
 0x3a7   :  { %479 = vmatpush.bf16.msra.mxu0 %v689_v7 }
 0x3ab   :  { %480 = vmatpush.bf16.msra.mxu0 %v697_v8 }
 0x3af   :  { %481 = vmatpush.bf16.msra.mxu0 %v705_v9 }
 0x3de   :  { %v403_v24 = vpop.f32.mrf.mxu1 }
 0x3df   :  { %v408_v25 = vrot.slane %v403_v24, 4 }
 0x3e1   :  { %v410_v26 = vadd.f32 %v408_v25, %v766_v61 }
 0x3e3   :  { %581 = vtanh.f32 %v410_v26 }
 0x3e6   :  { %v405_v27 = vpop.f32.mrf.mxu1 }
 0x3e9   :  { %v582_v28 = vpop.eup %581 }
 0x3ea   :  { %v438_v29 = vpack.c.bf16 %v582_v28, %v582_v28 }
 0x3ec   :  { %v440_v30 = vrot.slane %v438_v29, 2 }
 0x3ee   :  { %549 = vmatmul.msk.bf16.vlgmr.msrb.gmra.mxu2 %vm85_vm2, %v440_v30 }
 0x41f   :  { %v291_v31 = vpop.f32.mrf.mxu0 }
 0x420   :  { %v292_v6 = vadd.f32 %v737_v20, %v291_v31 }
 0x422   :  { %583 = vtanh.f32 %v292_v6 }
 0x427   :  { %v293_v7 = vpop.f32.mrf.mxu0 }
 0x428   :  { %v584_v32 = vpop.eup %583 }
 0x429   :  { %318 = vrot.lane.b32.xlu1 %v584_v32, %s622_s9 }
 0x471   :  { %v453_v8 = vpop.f32.mrf.mxu2 }
 0x472   :  { %v458_v59 = vrot.slane %v453_v8, 2 }
 0x474   :  { %v460_v60 = vadd.f32 %v458_v59, %v766_v61 }
 0x479   :  { %v455_v9 = vpop.f32.mrf.mxu2 }
 0x49b   :  { %v319_v33 = vpop.permute.xlu1 %318 }
 0x49c   :  { %v321_v34 = vsel %vm85_vm2, %v576_v1, %v319_v33 }
 0x49d   :  { %v322_v35 = vpack.c.bf16 %v321_v34, %v321_v34 }
 0x49f   :  { %544 = vmatmul.msk.bf16.vlgmr.msra.gmra.mxu3 %vm130_vm3, %v322_v35 }
 0x522   :  { %v335_v36 = vpop.f32.mrf.mxu3 }
 0x523   :  { %v336_v37 = vadd.f32 %v737_v20, %v335_v36 }
 0x525   :  { %585 = vtanh.f32 %v336_v37 }
 0x52a   :  { %v337_v38 = vpop.f32.mrf.mxu3 }
 0x52b   :  { %v586_v39 = vpop.eup %585 }
 0x52c   :  { %v363_v40 = vrot.slane %v586_v39, 6 }
 0x52e   :  { %364 = vrot.lane.b32.xlu2 %v363_v40, %s622_s9 }
 0x588   :  { %v365_v41 = vpop.permute.xlu2 %364 }
 0x589   :  { %v367_v42 = vsel %vm85_vm2, %v580_v16, %v365_v41 }
 0x58a   :  { %v368_v43 = vpack.c.bf16 %v367_v42, %v367_v42 }
 0x58c   :  { %v370_v44 = vrot.slane %v368_v43, 1 }
 0x58e   :  { %546 = vmatmul.msk.bf16.vlgmr.msrb.gmra.mxu0 %vm130_vm3, %v370_v44 }
 0x60b   :  { %v383_v45 = vpop.f32.mrf.mxu0 }
 0x60c   :  { %v384_v46 = vadd.f32 %v737_v20, %v383_v45 }
 0x60e   :  { %587 = vtanh.f32 %v384_v46 }
 0x613   :  { %v385_v47 = vpop.f32.mrf.mxu0 }
 0x614   :  { %v588_v48 = vpop.eup %587 }
 0x615   :  { %v413_v49 = vrot.slane %v588_v48, 4 }
 0x617   :  { %414 = vrot.lane.b32.xlu2 %v413_v49, %s622_s9 }
 0x671   :  { %v415_v50 = vpop.permute.xlu2 %414 }
 0x672   :  { %v417_v51 = vsel %vm85_vm2, %v582_v28, %v415_v50 }
 0x673   :  { %v418_v52 = vpack.c.bf16 %v417_v51, %v417_v51 }
 0x675   :  { %v420_v53 = vrot.slane %v418_v52, 2 }
 0x677   :  { %548 = vmatmul.msk.bf16.vlgmr.msrb.gmra.mxu3 %vm130_vm3, %v420_v53 }
 0x6fa   :  { %v433_v54 = vpop.f32.mrf.mxu3 }
 0x6fb   :  { %v434_v55 = vadd.f32 %v737_v20, %v433_v54 }
 0x6fd   :  { %589 = vtanh.f32 %v434_v55 }
 0x6fe   :  { %591 = vtanh.f32 %v460_v60 }
 0x702   :  { %v435_v56 = vpop.f32.mrf.mxu3 }
 0x703   :  { %v590_v57 = vpop.eup %589 }
 0x704   :  { %v463_v58 = vrot.slane %v590_v57, 2  ;;  %v592_v62 = vpop.eup %591 }
 0x706   :  { %464 = vrot.lane.b32.xlu0 %v463_v58, %s622_s9 }
 0x778   :  { %v465_v63 = vpop.permute.xlu0 %464 }
 0x779   :  { %v467_v0 = vsel %vm85_vm2, %v592_v62, %v465_v63 }
 0x77a   :  { %v468_v1 = vpack.c.bf16 %v467_v0, %v467_v0 }
 0x77c   :  { %v470_v2 = vrot.slane %v468_v1, 3 }
 0x77e   :  { %550 = vmatmul.msk.bf16.vlgmr.msra.gmra.mxu0 %vm130_vm3, %v470_v2 }
 0x7fb   :  { %v483_v3 = vpop.f32.mrf.mxu0 }
 0x7fc   :  { %v484_v4 = vadd.f32 %v737_v20, %v483_v3 }
 0x7fe   :  { %593 = vtanh.f32 %v484_v4 }
 0x803   :  { %v485_v61 = vpop.f32.mrf.mxu0 }
 0x804   :  { %v594_v5 = vpop.eup %593 }
 0x805   :  { %489 = vst.msk [vmem:[#allocation2] sm:$0x3] %vm488_vm4, %v594_v5 }
 0x806   :  { %500 = dma.vmem_to_hbm [thread:$0]  %s496_s10, 32, %s498_s13, [#allocation3]  }
 0x807   :  { %619 = dma.done.wait [#allocation3], 32  }
 0x808   :  { %620 = vsyncadd [#allocation3], 4294967264 }
 0x809   :  { %505 = vsyncpa [#allocation3], 1 }

</bundles_post_ra>
